<compile_context>
chip_gen: v7x
topology: tpu7x:2x2x1
jax: 0.10.0
libtpu: 0.0.40
codegen_flags: <defaults>
</compile_context>

<pallas_src>
import math
import functools

import jax
import jax.numpy as jnp
from jax import lax
from jax.experimental import pallas as pl
from jax.experimental.pallas import tpu as pltpu


# ----------------------------- math helpers -------------------------------

def _gelu_exact(x):
    # nn.GELU() default = exact (erf-based) GELU.
    return 0.5 * x * (1.0 + lax.erf(x * (1.0 / math.sqrt(2.0))))


def _layernorm(x, w, b, eps=1e-5):
    # PyTorch LayerNorm: biased variance over the last dim, eps inside rsqrt.
    mu = jnp.mean(x, axis=-1, keepdims=True)
    xc = x - mu
    var = jnp.mean(xc * xc, axis=-1, keepdims=True)
    return xc * lax.rsqrt(var + eps) * w + b


# ------------------------------- the kernel --------------------------------

def nkat_chunk_kernel(theta, d_model, d_ff, lpc,
                      alpha_ref,           # SMEM (L,)  f32  scalar-prefetch
                      h0_ref,              # (TB, D)    f32  projected input (+PE)
                      wv_ref, wo_ref,      # (lpc, D, D)            bf16
                      f1w_ref, f2w_ref,    # (lpc, D, F), (lpc, F, D) bf16
                      vec_ref,             # (lpc, 8, maxdf) f32 packed vectors
                      o_ref):              # (TB, D)    f32  carried hidden state
    c = pl.program_id(1)                   # layer-chunk index (innermost, "arbitrary")

    # Initialize the resident hidden state from the projected input at the
    # first chunk of each batch tile.  The output block index is constant
    # along the chunk axis, so o_ref stays resident in VMEM across chunks.
    @pl.when(c == 0)
    def _():
        o_ref[...] = h0_ref[...]

    def layer_body(i, x):
        wv = wv_ref[i]                                  # (D, D) bf16
        wo = wo_ref[i]
        f1w = f1w_ref[i]                                # (D, F) bf16
        f2w = f2w_ref[i]                                # (F, D) bf16
        vecs = vec_ref[i]                               # (8, maxdf) f32
        n1w = vecs[0:1, :d_model]
        n1b = vecs[1:2, :d_model]
        n2w = vecs[2:3, :d_model]
        n2b = vecs[3:4, :d_model]
        f2b = vecs[4:5, :d_model]
        f1b = vecs[5:6, :d_ff]
        alpha = alpha_ref[c * lpc + i]                  # SMEM scalar

        # ---- non-commutative self-attention (seq_len == 1) ----
        # TODO(synk): W_q/W_k (sin/cos) branch only enters through
        # softmax(QK^T), which is exactly 1 for a single key, so it is
        # intentionally not computed (verified against the PyTorch source).
        xb = x.astype(jnp.bfloat16)
        v = jnp.dot(xb, wv, preferred_element_type=jnp.float32)
        v_nc = v + (alpha * theta) * jnp.tanh(v)
        attn_out = jnp.dot(v_nc.astype(jnp.bfloat16), wo,
                           preferred_element_type=jnp.float32)

        # ---- residual + LayerNorm 1 (fp32) ----
        x1 = _layernorm(x + attn_out, n1w, n1b)

        # ---- feed-forward: Linear -> exact GELU -> Linear (bf16 w, f32 acc) ----
        h1 = jnp.dot(x1.astype(jnp.bfloat16), f1w,
                     preferred_element_type=jnp.float32) + f1b
        h2 = jnp.dot(_gelu_exact(h1).astype(jnp.bfloat16), f2w,
                     preferred_element_type=jnp.float32) + f2b

        # ---- residual + LayerNorm 2 (fp32) ----
        return _layernorm(x1 + h2, n2w, n2b)

    o_ref[...] = lax.fori_loop(0, lpc, layer_body, o_ref[...], unroll=True)


# ------------------------------ parameters ---------------------------------

def init_params(key, input_dim, d_model, n_heads, n_layers, d_ff, num_classes):
    assert d_model % n_heads == 0
    ks = jax.random.split(key, 6)
    s = 1.0 / math.sqrt(d_model)

    def nrm(k, shape, scale, dtype=jnp.float32):
        return (jax.random.normal(k, shape, dtype=jnp.float32) * scale).astype(dtype)

    params = dict(
        # once-used projections stay fp32 (computed outside the kernel)
        wp=nrm(ks[0], (input_dim, d_model), 1.0 / math.sqrt(input_dim)),
        bp=jnp.zeros((1, d_model), jnp.float32),
        wout=nrm(ks[5], (d_model, num_classes), s),
        bout=jnp.zeros((1, num_classes), jnp.float32),
        # per-layer matmul weights in bf16 (kernel is weight-bandwidth bound)
        wv=nrm(ks[1], (n_layers, d_model, d_model), s, jnp.bfloat16),
        wo=nrm(ks[2], (n_layers, d_model, d_model), s, jnp.bfloat16),
        f1w=nrm(ks[3], (n_layers, d_model, d_ff), 1.0 / math.sqrt(d_model),
                jnp.bfloat16),
        f2w=nrm(ks[4], (n_layers, d_ff, d_model), 1.0 / math.sqrt(d_ff),
                jnp.bfloat16),
        # per-layer alpha scalars go to SMEM via scalar prefetch
        alphas=jnp.ones((n_layers,), jnp.float32),
    )

    # Pack small per-layer vectors into one (L, 8, max(D, F)) fp32 tensor:
    #   row 0: norm1.weight  row 1: norm1.bias
    #   row 2: norm2.weight  row 3: norm2.bias
    #   row 4: ff2.bias      row 5: ff1.bias     rows 6-7: padding
    maxdf = max(d_model, d_ff)
    vecs = jnp.zeros((n_layers, 8, maxdf), jnp.float32)
    vecs = vecs.at[:, 0, :d_model].set(1.0)   # norm1.weight
    vecs = vecs.at[:, 2, :d_model].set(1.0)   # norm2.weight
    params["vecs"] = vecs

    # PositionalEncoding row for position 0: [sin(0), cos(0), ...] = [0,1,0,1,...]
    div = jnp.exp(jnp.arange(0, d_model, 2, dtype=jnp.float32)
                  * (-math.log(10000.0) / d_model))
    pe0 = jnp.zeros((d_model,), jnp.float32)
    pe0 = pe0.at[0::2].set(jnp.sin(0.0 * div)).at[1::2].set(jnp.cos(0.0 * div))
    params["pe0"] = pe0.reshape(1, d_model)
    return params


# --------------------------- sizing / hw helpers -----------------------------

def _round_up(n, m):
    return -(-n // m) * m


def _tpu_hw():
    vmem_phys = 128 << 20
    try:
        vmem_phys = int(pltpu.get_tpu_info().vmem_capacity_bytes)
    except Exception:
        pass
    kind = ""
    try:
        kind = jax.devices()[0].device_kind.lower()
    except Exception:
        pass
    is_v5e = ("v5 lite" in kind) or ("v5e" in kind)
    two_core = vmem_phys <= (64 << 20)   # v7x heuristic: 64 MiB VMEM/TC, 2 TCs/chip
    return vmem_phys, is_v5e, two_core


def _vmem_estimate(tb, lpc, D, F, maxdf):
    # bf16 matmul weights + f32 packed vectors per layer chunk, double-buffered.
    w_chunk = lpc * ((2 * D * D + 2 * D * F) * 2 + 8 * maxdf * 4)
    io = 2 * 2 * tb * D * 4            # h0 + output blocks, double-buffered, f32
    act = tb * (F + 8 * D) * 4         # rough live f32 temporaries in the body
    return 2 * w_chunk + io + act


# ------------------------------ host wrapper --------------------------------

def nkat_forward(x, params, theta=0.1):
    B = x.shape[0]
    x2d = x.reshape(B, -1).astype(jnp.float32)          # x.view(batch, -1)

    L, D, _ = params["wv"].shape
    F = params["f1w"].shape[2]
    maxdf = params["vecs"].shape[2]

    vmem_phys, is_v5e, two_core = _tpu_hw()
    # ~48 MiB on v7x (64 MiB physical), ~96 MiB on v5e/v6e (128 MiB physical).
    vmem_cap = int(min(0.75 * vmem_phys, 100 << 20))

    # ---- batch tiling: large tiles amortize weight DMAs over more MXU rows ----
    b_pad8 = _round_up(B, 8)
    tb = min(b_pad8, 128 if is_v5e else 256)
    if two_core and b_pad8 >= 16:
        # v7x: guarantee >= 2 parallel batch tiles so both TensorCores are fed.
        tb = min(tb, _round_up((b_pad8 + 1) // 2, 8))
    # Shrink the tile if the f32 activation working set alone would blow VMEM.
    while tb > 8 and (tb * (F + 16 * D) * 4) > vmem_cap // 2:
        tb = max(8, _round_up(tb // 2, 8))
    n_tiles = -(-b_pad8 // tb)
    b_pad = n_tiles * tb

    # ---- layer chunking: hold as many layers' weights VMEM-resident as fit.
    # With lpc == L the weight block index is constant across the whole grid,
    # so the bf16 weight stack is DMA'd from HBM exactly once per call.
    lpc = 1
    for cand in range(L, 0, -1):
        if L % cand == 0 and _vmem_estimate(tb, cand, D, F, maxdf) <= int(0.8 * vmem_cap):
            lpc = cand
            break
    n_chunks = L // lpc

    est = _vmem_estimate(tb, lpc, D, F, maxdf)
    vmem_limit = int(min(vmem_cap, max(32 << 20, int(1.5 * est))))

    # Hoisted, once-used input projection + positional encoding (position 0).
    h0 = (jnp.dot(x2d, params["wp"], preferred_element_type=jnp.float32)
          + params["bp"] + params["pe0"])                # (B, D)
    h0 = jnp.pad(h0, ((0, b_pad - B), (0, 0)))           # padded rows are benign

    grid_spec = pltpu.PrefetchScalarGridSpec(
        num_scalar_prefetch=1,                            # alphas -> SMEM
        grid=(n_tiles, n_chunks),                         # (parallel, arbitrary)
        in_specs=[
            pl.BlockSpec((tb, D), lambda b, c, a: (b, 0)),        # h0
            pl.BlockSpec((lpc, D, D), lambda b, c, a: (c, 0, 0)),  # wv
            pl.BlockSpec((lpc, D, D), lambda b, c, a: (c, 0, 0)),  # wo
            pl.BlockSpec((lpc, D, F), lambda b, c, a: (c, 0, 0)),  # f1w
            pl.BlockSpec((lpc, F, D), lambda b, c, a: (c, 0, 0)),  # f2w
            pl.BlockSpec((lpc, 8, maxdf), lambda b, c, a: (c, 0, 0)),  # vecs
        ],
        out_specs=pl.BlockSpec((tb, D), lambda b, c, a: (b, 0)),
    )

    # TODO(synk): on v7x with large D, alias h0 to the output
    # (input_output_aliases) and/or store weights in fp8 for extra headroom.
    h_final = pl.pallas_call(
        functools.partial(nkat_chunk_kernel, float(theta), D, F, lpc),
        out_shape=jax.ShapeDtypeStruct((b_pad, D), jnp.float32),
        grid_spec=grid_spec,
        compiler_params=pltpu.CompilerParams(
            dimension_semantics=("parallel", "arbitrary"),
            vmem_limit_bytes=vmem_limit),
    )(params["alphas"], h0, params["wv"], params["wo"],
      params["f1w"], params["f2w"], params["vecs"])

    # Hoisted output projection (used once; keeps kernel stores lane-dense).
    out = (jnp.dot(h_final[:B], params["wout"],
                   preferred_element_type=jnp.float32) + params["bout"])
    return out


# --------------------------- pure-JAX reference -----------------------------

def nkat_reference(x, params, theta=0.1):
    """fp32 reference of the PyTorch forward (inference, same bf16 weights)."""
    B = x.shape[0]
    h = x.reshape(B, -1).astype(jnp.float32)
    h = h @ params["wp"] + params["bp"] + params["pe0"]
    L, D, _ = params["wv"].shape
    F = params["f1w"].shape[2]
    for l in range(L):
        wv = params["wv"][l].astype(jnp.float32)
        wo = params["wo"][l].astype(jnp.float32)
        f1w = params["f1w"][l].astype(jnp.float32)
        f2w = params["f2w"][l].astype(jnp.float32)
        vec = params["vecs"][l]
        n1w, n1b = vec[0, :D], vec[1, :D]
        n2w, n2b = vec[2, :D], vec[3, :D]
        f2b, f1b = vec[4, :D], vec[5, :F]
        alpha = params["alphas"][l]
        v = h @ wv
        v_nc = v + alpha * theta * jnp.tanh(v)
        attn_out = v_nc @ wo          # softmax over one key == 1 exactly
        x1 = _layernorm(h + attn_out, n1w, n1b)
        h1 = x1 @ f1w + f1b
        h2 = _gelu_exact(h1) @ f2w + f2b
        h = _layernorm(x1 + h2, n2w, n2b)
    return h @ params["wout"] + params["bout"]


# ----------------------------------- main -----------------------------------

if __name__ == "__main__":
    # Small config: input x of shape (2, 4, 8) -> input_dim = 32.
    B = 2
    input_dim, d_model, n_heads, n_layers, d_ff, num_classes = 32, 128, 4, 2, 256, 8

    key = jax.random.PRNGKey(0)
    k_x, k_p = jax.random.split(key)
    x = jax.random.normal(k_x, (B, 4, 8), dtype=jnp.float32)  # flattened inside

    params = init_params(k_p, input_dim, d_model, n_heads, n_layers, d_ff,
                         num_classes)

    out = nkat_forward(x, params, theta=0.1)
    out = jax.block_until_ready(out)
    assert out.shape == (B, num_classes) and out.dtype == jnp.float32
    assert bool(jnp.all(jnp.isfinite(out)))

    ref = nkat_reference(x, params, theta=0.1)
    err = float(jnp.max(jnp.abs(out - ref)))
    assert err < 5e-2, f"max abs error vs reference: {err}"

    print("KERNEL_OK")
</pallas_src>

<mosaic_0001>
module attributes {stable_mosaic.version = 11 : i64} {
  func.func @nkat_chunk_kernel(%arg0: i32, %arg1: i32, %arg2: memref<2xf32, #tpu.memory_space<smem>>, %arg3: memref<8x128xf32, #tpu.memory_space<vmem>>, %arg4: memref<2x128x128xbf16, #tpu.memory_space<vmem>>, %arg5: memref<2x128x128xbf16, #tpu.memory_space<vmem>>, %arg6: memref<2x128x256xbf16, #tpu.memory_space<vmem>>, %arg7: memref<2x256x128xbf16, #tpu.memory_space<vmem>>, %arg8: memref<2x8x256xf32, #tpu.memory_space<vmem>>, %arg9: memref<8x128xf32, #tpu.memory_space<vmem>>) attributes {dimension_semantics = [#tpu.dimension_semantics<parallel>, #tpu.dimension_semantics<arbitrary>], iteration_bounds = array<i64: 1, 1>, scalar_prefetch = 1 : i64, scratch_operands = 0 : i64, tpu.core_type = #tpu.core_type<tc>, window_params = [{transform_indices = @transform_0, window_bounds = array<i64: 8, 128>}, {transform_indices = @transform_1, window_bounds = array<i64: 2, 128, 128>}, {transform_indices = @transform_2, window_bounds = array<i64: 2, 128, 128>}, {transform_indices = @transform_3, window_bounds = array<i64: 2, 128, 256>}, {transform_indices = @transform_4, window_bounds = array<i64: 2, 256, 128>}, {transform_indices = @transform_5, window_bounds = array<i64: 2, 8, 256>}, {transform_indices = @transform_6, window_bounds = array<i64: 8, 128>}]} {
    %c0_i32 = arith.constant 0 : i32
    %0 = arith.cmpi eq, %arg1, %c0_i32 : i32
    %1 = arith.extui %0 : i1 to i32
    %c0_i32_0 = arith.constant 0 : i32
    %2 = arith.cmpi ne, %1, %c0_i32_0 : i32
    scf.if %2 {
      %c0_62 = arith.constant 0 : index
      %c0_63 = arith.constant 0 : index
      %189 = vector.load %arg3[%c0_62, %c0_63] : memref<8x128xf32, #tpu.memory_space<vmem>>, vector<8x128xf32>
      %c0_64 = arith.constant 0 : index
      %c0_65 = arith.constant 0 : index
      %190 = vector.load %arg9[%c0_64, %c0_65] : memref<8x128xf32, #tpu.memory_space<vmem>>, vector<8x128xf32>
      tpu.vector_store %arg9[%c0_64, %c0_65], %189 {strides = array<i32>} : memref<8x128xf32, #tpu.memory_space<vmem>>, vector<8x128xf32>,
    } else {
    }
    %c0 = arith.constant 0 : index
    %c0_1 = arith.constant 0 : index
    %3 = vector.load %arg9[%c0, %c0_1] : memref<8x128xf32, #tpu.memory_space<vmem>>, vector<8x128xf32>
    %c0_i32_2 = arith.constant 0 : i32
    %4 = arith.index_cast %c0_i32_2 : i32 to index
    %c0_3 = arith.constant 0 : index
    %c0_4 = arith.constant 0 : index
    %5 = vector.load %arg4[%4, %c0_3, %c0_4] : memref<2x128x128xbf16, #tpu.memory_space<vmem>>, vector<1x128x128xbf16>
    %6 = vector.shape_cast %5 : vector<1x128x128xbf16> to vector<128x128xbf16>
    %7 = arith.index_cast %c0_i32_2 : i32 to index
    %c0_5 = arith.constant 0 : index
    %c0_6 = arith.constant 0 : index
    %8 = vector.load %arg5[%7, %c0_5, %c0_6] : memref<2x128x128xbf16, #tpu.memory_space<vmem>>, vector<1x128x128xbf16>
    %9 = vector.shape_cast %8 : vector<1x128x128xbf16> to vector<128x128xbf16>
    %10 = arith.index_cast %c0_i32_2 : i32 to index
    %c0_7 = arith.constant 0 : index
    %c0_8 = arith.constant 0 : index
    %11 = vector.load %arg6[%10, %c0_7, %c0_8] : memref<2x128x256xbf16, #tpu.memory_space<vmem>>, vector<1x128x256xbf16>
    %12 = vector.shape_cast %11 : vector<1x128x256xbf16> to vector<128x256xbf16>
    %13 = arith.index_cast %c0_i32_2 : i32 to index
    %c0_9 = arith.constant 0 : index
    %c0_10 = arith.constant 0 : index
    %14 = vector.load %arg7[%13, %c0_9, %c0_10] : memref<2x256x128xbf16, #tpu.memory_space<vmem>>, vector<1x256x128xbf16>
    %15 = vector.shape_cast %14 : vector<1x256x128xbf16> to vector<256x128xbf16>
    %16 = arith.index_cast %c0_i32_2 : i32 to index
    %c0_11 = arith.constant 0 : index
    %c0_12 = arith.constant 0 : index
    %17 = vector.load %arg8[%16, %c0_11, %c0_12] : memref<2x8x256xf32, #tpu.memory_space<vmem>>, vector<1x8x256xf32>
    %18 = vector.shape_cast %17 : vector<1x8x256xf32> to vector<8x256xf32>
    %19 = vector.extract_strided_slice %18 {offsets = [0, 0], sizes = [1, 128], strides = [1, 1]} : vector<8x256xf32> to vector<1x128xf32>
    %20 = vector.extract_strided_slice %18 {offsets = [1, 0], sizes = [1, 128], strides = [1, 1]} : vector<8x256xf32> to vector<1x128xf32>
    %21 = vector.extract_strided_slice %18 {offsets = [2, 0], sizes = [1, 128], strides = [1, 1]} : vector<8x256xf32> to vector<1x128xf32>
    %22 = vector.extract_strided_slice %18 {offsets = [3, 0], sizes = [1, 128], strides = [1, 1]} : vector<8x256xf32> to vector<1x128xf32>
    %23 = vector.extract_strided_slice %18 {offsets = [4, 0], sizes = [1, 128], strides = [1, 1]} : vector<8x256xf32> to vector<1x128xf32>
    %24 = vector.extract_strided_slice %18 {offsets = [5, 0], sizes = [1, 256], strides = [1, 1]} : vector<8x256xf32> to vector<1x256xf32>
    %c2_i32 = arith.constant 2 : i32
    %25 = arith.muli %arg1, %c2_i32 : i32
    %26 = arith.addi %25, %c0_i32_2 : i32
    %27 = arith.index_cast %26 : i32 to index
    %28 = memref.load %arg2[%27] : memref<2xf32, #tpu.memory_space<smem>>
    %29 = arith.truncf %3 : vector<8x128xf32> to vector<8x128xbf16>
    %cst = arith.constant dense<0.000000e+00> : vector<8x128xf32>
    %30 = tpu.matmul %29, %6, %cst {dimension_numbers = #tpu.dot_dimension_numbers<[1], [0], [0], [1], [0, 0, 1, 1], [], []>} : vector<8x128xbf16>, vector<128x128xbf16>, vector<8x128xf32> -> vector<8x128xf32>
    %cst_13 = arith.constant 1.000000e-01 : f32
    %31 = arith.mulf %28, %cst_13 : f32
    %32 = math.tanh %30 : vector<8x128xf32>
    %33 = vector.broadcast %31 : f32 to vector<8x128xf32>
    %34 = arith.mulf %33, %32 : vector<8x128xf32>
    %35 = arith.addf %30, %34 : vector<8x128xf32>
    %36 = arith.truncf %35 : vector<8x128xf32> to vector<8x128xbf16>
    %cst_14 = arith.constant dense<0.000000e+00> : vector<8x128xf32>
    %37 = tpu.matmul %36, %9, %cst_14 {dimension_numbers = #tpu.dot_dimension_numbers<[1], [0], [0], [1], [0, 0, 1, 1], [], []>} : vector<8x128xbf16>, vector<128x128xbf16>, vector<8x128xf32> -> vector<8x128xf32>
    %38 = arith.addf %3, %37 : vector<8x128xf32>
    %cst_15 = arith.constant dense<0.000000e+00> : vector<8xf32>
    %39 = vector.multi_reduction <add>, %38, %cst_15 [1] : vector<8x128xf32> to vector<8xf32>
    %40 = vector.shape_cast %39 : vector<8xf32> to vector<8x1xf32>
    %cst_16 = arith.constant 1.280000e+02 : f32
    %41 = vector.broadcast %cst_16 : f32 to vector<8x1xf32>
    %42 = arith.divf %40, %41 : vector<8x1xf32>
    %43 = vector.broadcast %42 : vector<8x1xf32> to vector<8x128xf32>
    %44 = arith.subf %38, %43 : vector<8x128xf32>
    %45 = arith.mulf %44, %44 : vector<8x128xf32>
    %cst_17 = arith.constant dense<0.000000e+00> : vector<8xf32>
    %46 = vector.multi_reduction <add>, %45, %cst_17 [1] : vector<8x128xf32> to vector<8xf32>
    %47 = vector.shape_cast %46 : vector<8xf32> to vector<8x1xf32>
    %cst_18 = arith.constant 1.280000e+02 : f32
    %48 = vector.broadcast %cst_18 : f32 to vector<8x1xf32>
    %49 = arith.divf %47, %48 : vector<8x1xf32>
    %cst_19 = arith.constant 9.99999974E-6 : f32
    %50 = vector.broadcast %cst_19 : f32 to vector<8x1xf32>
    %51 = arith.addf %49, %50 : vector<8x1xf32>
    %52 = math.rsqrt %51 : vector<8x1xf32>
    %53 = vector.broadcast %52 : vector<8x1xf32> to vector<8x128xf32>
    %54 = arith.mulf %44, %53 : vector<8x128xf32>
    %55 = vector.broadcast %19 : vector<1x128xf32> to vector<8x128xf32>
    %56 = arith.mulf %54, %55 : vector<8x128xf32>
    %57 = vector.broadcast %20 : vector<1x128xf32> to vector<8x128xf32>
    %58 = arith.addf %56, %57 : vector<8x128xf32>
    %59 = arith.truncf %58 : vector<8x128xf32> to vector<8x128xbf16>
    %cst_20 = arith.constant dense<0.000000e+00> : vector<8x256xf32>
    %60 = tpu.matmul %59, %12, %cst_20 {dimension_numbers = #tpu.dot_dimension_numbers<[1], [0], [0], [1], [0, 0, 1, 1], [], []>} : vector<8x128xbf16>, vector<128x256xbf16>, vector<8x256xf32> -> vector<8x256xf32>
    %61 = vector.broadcast %24 : vector<1x256xf32> to vector<8x256xf32>
    %62 = arith.addf %60, %61 : vector<8x256xf32>
    %cst_21 = arith.constant 5.000000e-01 : f32
    %63 = vector.broadcast %cst_21 : f32 to vector<8x256xf32>
    %64 = arith.mulf %63, %62 : vector<8x256xf32>
    %cst_22 = arith.constant 0.707106769 : f32
    %65 = vector.broadcast %cst_22 : f32 to vector<8x256xf32>
    %66 = arith.mulf %62, %65 : vector<8x256xf32>
    %67 = math.erf %66 : vector<8x256xf32>
    %cst_23 = arith.constant 1.000000e+00 : f32
    %68 = vector.broadcast %cst_23 : f32 to vector<8x256xf32>
    %69 = arith.addf %68, %67 : vector<8x256xf32>
    %70 = arith.mulf %64, %69 : vector<8x256xf32>
    %71 = arith.truncf %70 : vector<8x256xf32> to vector<8x256xbf16>
    %cst_24 = arith.constant dense<0.000000e+00> : vector<8x128xf32>
    %72 = tpu.matmul %71, %15, %cst_24 {dimension_numbers = #tpu.dot_dimension_numbers<[1], [0], [0], [1], [0, 0, 1, 1], [], []>} : vector<8x256xbf16>, vector<256x128xbf16>, vector<8x128xf32> -> vector<8x128xf32>
    %73 = vector.broadcast %23 : vector<1x128xf32> to vector<8x128xf32>
    %74 = arith.addf %72, %73 : vector<8x128xf32>
    %75 = arith.addf %58, %74 : vector<8x128xf32>
    %cst_25 = arith.constant dense<0.000000e+00> : vector<8xf32>
    %76 = vector.multi_reduction <add>, %75, %cst_25 [1] : vector<8x128xf32> to vector<8xf32>
    %77 = vector.shape_cast %76 : vector<8xf32> to vector<8x1xf32>
    %cst_26 = arith.constant 1.280000e+02 : f32
    %78 = vector.broadcast %cst_26 : f32 to vector<8x1xf32>
    %79 = arith.divf %77, %78 : vector<8x1xf32>
    %80 = vector.broadcast %79 : vector<8x1xf32> to vector<8x128xf32>
    %81 = arith.subf %75, %80 : vector<8x128xf32>
    %82 = arith.mulf %81, %81 : vector<8x128xf32>
    %cst_27 = arith.constant dense<0.000000e+00> : vector<8xf32>
    %83 = vector.multi_reduction <add>, %82, %cst_27 [1] : vector<8x128xf32> to vector<8xf32>
    %84 = vector.shape_cast %83 : vector<8xf32> to vector<8x1xf32>
    %cst_28 = arith.constant 1.280000e+02 : f32
    %85 = vector.broadcast %cst_28 : f32 to vector<8x1xf32>
    %86 = arith.divf %84, %85 : vector<8x1xf32>
    %cst_29 = arith.constant 9.99999974E-6 : f32
    %87 = vector.broadcast %cst_29 : f32 to vector<8x1xf32>
    %88 = arith.addf %86, %87 : vector<8x1xf32>
    %89 = math.rsqrt %88 : vector<8x1xf32>
    %90 = vector.broadcast %89 : vector<8x1xf32> to vector<8x128xf32>
    %91 = arith.mulf %81, %90 : vector<8x128xf32>
    %92 = vector.broadcast %21 : vector<1x128xf32> to vector<8x128xf32>
    %93 = arith.mulf %91, %92 : vector<8x128xf32>
    %94 = vector.broadcast %22 : vector<1x128xf32> to vector<8x128xf32>
    %95 = arith.addf %93, %94 : vector<8x128xf32>
    %c1_i32 = arith.constant 1 : i32
    %96 = arith.index_cast %c1_i32 : i32 to index
    %c0_30 = arith.constant 0 : index
    %c0_31 = arith.constant 0 : index
    %97 = vector.load %arg4[%96, %c0_30, %c0_31] : memref<2x128x128xbf16, #tpu.memory_space<vmem>>, vector<1x128x128xbf16>
    %98 = vector.shape_cast %97 : vector<1x128x128xbf16> to vector<128x128xbf16>
    %99 = arith.index_cast %c1_i32 : i32 to index
    %c0_32 = arith.constant 0 : index
    %c0_33 = arith.constant 0 : index
    %100 = vector.load %arg5[%99, %c0_32, %c0_33] : memref<2x128x128xbf16, #tpu.memory_space<vmem>>, vector<1x128x128xbf16>
    %101 = vector.shape_cast %100 : vector<1x128x128xbf16> to vector<128x128xbf16>
    %102 = arith.index_cast %c1_i32 : i32 to index
    %c0_34 = arith.constant 0 : index
    %c0_35 = arith.constant 0 : index
    %103 = vector.load %arg6[%102, %c0_34, %c0_35] : memref<2x128x256xbf16, #tpu.memory_space<vmem>>, vector<1x128x256xbf16>
    %104 = vector.shape_cast %103 : vector<1x128x256xbf16> to vector<128x256xbf16>
    %105 = arith.index_cast %c1_i32 : i32 to index
    %c0_36 = arith.constant 0 : index
    %c0_37 = arith.constant 0 : index
    %106 = vector.load %arg7[%105, %c0_36, %c0_37] : memref<2x256x128xbf16, #tpu.memory_space<vmem>>, vector<1x256x128xbf16>
    %107 = vector.shape_cast %106 : vector<1x256x128xbf16> to vector<256x128xbf16>
    %108 = arith.index_cast %c1_i32 : i32 to index
    %c0_38 = arith.constant 0 : index
    %c0_39 = arith.constant 0 : index
    %109 = vector.load %arg8[%108, %c0_38, %c0_39] : memref<2x8x256xf32, #tpu.memory_space<vmem>>, vector<1x8x256xf32>
    %110 = vector.shape_cast %109 : vector<1x8x256xf32> to vector<8x256xf32>
    %111 = vector.extract_strided_slice %110 {offsets = [0, 0], sizes = [1, 128], strides = [1, 1]} : vector<8x256xf32> to vector<1x128xf32>
    %112 = vector.extract_strided_slice %110 {offsets = [1, 0], sizes = [1, 128], strides = [1, 1]} : vector<8x256xf32> to vector<1x128xf32>
    %113 = vector.extract_strided_slice %110 {offsets = [2, 0], sizes = [1, 128], strides = [1, 1]} : vector<8x256xf32> to vector<1x128xf32>
    %114 = vector.extract_strided_slice %110 {offsets = [3, 0], sizes = [1, 128], strides = [1, 1]} : vector<8x256xf32> to vector<1x128xf32>
    %115 = vector.extract_strided_slice %110 {offsets = [4, 0], sizes = [1, 128], strides = [1, 1]} : vector<8x256xf32> to vector<1x128xf32>
    %116 = vector.extract_strided_slice %110 {offsets = [5, 0], sizes = [1, 256], strides = [1, 1]} : vector<8x256xf32> to vector<1x256xf32>
    %c2_i32_40 = arith.constant 2 : i32
    %117 = arith.muli %arg1, %c2_i32_40 : i32
    %118 = arith.addi %117, %c1_i32 : i32
    %119 = arith.index_cast %118 : i32 to index
    %120 = memref.load %arg2[%119] : memref<2xf32, #tpu.memory_space<smem>>
    %121 = arith.truncf %95 : vector<8x128xf32> to vector<8x128xbf16>
    %cst_41 = arith.constant dense<0.000000e+00> : vector<8x128xf32>
    %122 = tpu.matmul %121, %98, %cst_41 {dimension_numbers = #tpu.dot_dimension_numbers<[1], [0], [0], [1], [0, 0, 1, 1], [], []>} : vector<8x128xbf16>, vector<128x128xbf16>, vector<8x128xf32> -> vector<8x128xf32>
    %cst_42 = arith.constant 1.000000e-01 : f32
    %123 = arith.mulf %120, %cst_42 : f32
    %124 = math.tanh %122 : vector<8x128xf32>
    %125 = vector.broadcast %123 : f32 to vector<8x128xf32>
    %126 = arith.mulf %125, %124 : vector<8x128xf32>
    %127 = arith.addf %122, %126 : vector<8x128xf32>
    %128 = arith.truncf %127 : vector<8x128xf32> to vector<8x128xbf16>
    %cst_43 = arith.constant dense<0.000000e+00> : vector<8x128xf32>
    %129 = tpu.matmul %128, %101, %cst_43 {dimension_numbers = #tpu.dot_dimension_numbers<[1], [0], [0], [1], [0, 0, 1, 1], [], []>} : vector<8x128xbf16>, vector<128x128xbf16>, vector<8x128xf32> -> vector<8x128xf32>
    %130 = arith.addf %95, %129 : vector<8x128xf32>
    %cst_44 = arith.constant dense<0.000000e+00> : vector<8xf32>
    %131 = vector.multi_reduction <add>, %130, %cst_44 [1] : vector<8x128xf32> to vector<8xf32>
    %132 = vector.shape_cast %131 : vector<8xf32> to vector<8x1xf32>
    %cst_45 = arith.constant 1.280000e+02 : f32
    %133 = vector.broadcast %cst_45 : f32 to vector<8x1xf32>
    %134 = arith.divf %132, %133 : vector<8x1xf32>
    %135 = vector.broadcast %134 : vector<8x1xf32> to vector<8x128xf32>
    %136 = arith.subf %130, %135 : vector<8x128xf32>
    %137 = arith.mulf %136, %136 : vector<8x128xf32>
    %cst_46 = arith.constant dense<0.000000e+00> : vector<8xf32>
    %138 = vector.multi_reduction <add>, %137, %cst_46 [1] : vector<8x128xf32> to vector<8xf32>
    %139 = vector.shape_cast %138 : vector<8xf32> to vector<8x1xf32>
    %cst_47 = arith.constant 1.280000e+02 : f32
    %140 = vector.broadcast %cst_47 : f32 to vector<8x1xf32>
    %141 = arith.divf %139, %140 : vector<8x1xf32>
    %cst_48 = arith.constant 9.99999974E-6 : f32
    %142 = vector.broadcast %cst_48 : f32 to vector<8x1xf32>
    %143 = arith.addf %141, %142 : vector<8x1xf32>
    %144 = math.rsqrt %143 : vector<8x1xf32>
    %145 = vector.broadcast %144 : vector<8x1xf32> to vector<8x128xf32>
    %146 = arith.mulf %136, %145 : vector<8x128xf32>
    %147 = vector.broadcast %111 : vector<1x128xf32> to vector<8x128xf32>
    %148 = arith.mulf %146, %147 : vector<8x128xf32>
    %149 = vector.broadcast %112 : vector<1x128xf32> to vector<8x128xf32>
    %150 = arith.addf %148, %149 : vector<8x128xf32>
    %151 = arith.truncf %150 : vector<8x128xf32> to vector<8x128xbf16>
    %cst_49 = arith.constant dense<0.000000e+00> : vector<8x256xf32>
    %152 = tpu.matmul %151, %104, %cst_49 {dimension_numbers = #tpu.dot_dimension_numbers<[1], [0], [0], [1], [0, 0, 1, 1], [], []>} : vector<8x128xbf16>, vector<128x256xbf16>, vector<8x256xf32> -> vector<8x256xf32>
    %153 = vector.broadcast %116 : vector<1x256xf32> to vector<8x256xf32>
    %154 = arith.addf %152, %153 : vector<8x256xf32>
    %cst_50 = arith.constant 5.000000e-01 : f32
    %155 = vector.broadcast %cst_50 : f32 to vector<8x256xf32>
    %156 = arith.mulf %155, %154 : vector<8x256xf32>
    %cst_51 = arith.constant 0.707106769 : f32
    %157 = vector.broadcast %cst_51 : f32 to vector<8x256xf32>
    %158 = arith.mulf %154, %157 : vector<8x256xf32>
    %159 = math.erf %158 : vector<8x256xf32>
    %cst_52 = arith.constant 1.000000e+00 : f32
    %160 = vector.broadcast %cst_52 : f32 to vector<8x256xf32>
    %161 = arith.addf %160, %159 : vector<8x256xf32>
    %162 = arith.mulf %156, %161 : vector<8x256xf32>
    %163 = arith.truncf %162 : vector<8x256xf32> to vector<8x256xbf16>
    %cst_53 = arith.constant dense<0.000000e+00> : vector<8x128xf32>
    %164 = tpu.matmul %163, %107, %cst_53 {dimension_numbers = #tpu.dot_dimension_numbers<[1], [0], [0], [1], [0, 0, 1, 1], [], []>} : vector<8x256xbf16>, vector<256x128xbf16>, vector<8x128xf32> -> vector<8x128xf32>
    %165 = vector.broadcast %115 : vector<1x128xf32> to vector<8x128xf32>
    %166 = arith.addf %164, %165 : vector<8x128xf32>
    %167 = arith.addf %150, %166 : vector<8x128xf32>
    %cst_54 = arith.constant dense<0.000000e+00> : vector<8xf32>
    %168 = vector.multi_reduction <add>, %167, %cst_54 [1] : vector<8x128xf32> to vector<8xf32>
    %169 = vector.shape_cast %168 : vector<8xf32> to vector<8x1xf32>
    %cst_55 = arith.constant 1.280000e+02 : f32
    %170 = vector.broadcast %cst_55 : f32 to vector<8x1xf32>
    %171 = arith.divf %169, %170 : vector<8x1xf32>
    %172 = vector.broadcast %171 : vector<8x1xf32> to vector<8x128xf32>
    %173 = arith.subf %167, %172 : vector<8x128xf32>
    %174 = arith.mulf %173, %173 : vector<8x128xf32>
    %cst_56 = arith.constant dense<0.000000e+00> : vector<8xf32>
    %175 = vector.multi_reduction <add>, %174, %cst_56 [1] : vector<8x128xf32> to vector<8xf32>
    %176 = vector.shape_cast %175 : vector<8xf32> to vector<8x1xf32>
    %cst_57 = arith.constant 1.280000e+02 : f32
    %177 = vector.broadcast %cst_57 : f32 to vector<8x1xf32>
    %178 = arith.divf %176, %177 : vector<8x1xf32>
    %cst_58 = arith.constant 9.99999974E-6 : f32
    %179 = vector.broadcast %cst_58 : f32 to vector<8x1xf32>
    %180 = arith.addf %178, %179 : vector<8x1xf32>
    %181 = math.rsqrt %180 : vector<8x1xf32>
    %182 = vector.broadcast %181 : vector<8x1xf32> to vector<8x128xf32>
    %183 = arith.mulf %173, %182 : vector<8x128xf32>
    %184 = vector.broadcast %113 : vector<1x128xf32> to vector<8x128xf32>
    %185 = arith.mulf %183, %184 : vector<8x128xf32>
    %186 = vector.broadcast %114 : vector<1x128xf32> to vector<8x128xf32>
    %187 = arith.addf %185, %186 : vector<8x128xf32>
    %c2_i32_59 = arith.constant 2 : i32
    %c0_60 = arith.constant 0 : index
    %c0_61 = arith.constant 0 : index
    %188 = vector.load %arg9[%c0_60, %c0_61] : memref<8x128xf32, #tpu.memory_space<vmem>>, vector<8x128xf32>
    tpu.vector_store %arg9[%c0_60, %c0_61], %187 {strides = array<i32>} : memref<8x128xf32, #tpu.memory_space<vmem>>, vector<8x128xf32>,
    return
  }
  func.func @transform_0(%arg0: i32, %arg1: i32, %arg2: memref<2xf32, #tpu.memory_space<smem>>) -> (i32, i32) {
    %c0_i32 = arith.constant 0 : i32
    %c0_i32_0 = arith.constant 0 : i32
    return %arg0, %c0_i32 : i32, i32
  }
  func.func @transform_1(%arg0: i32, %arg1: i32, %arg2: memref<2xf32, #tpu.memory_space<smem>>) -> (i32, i32, i32) {
    %c0_i32 = arith.constant 0 : i32
    %c0_i32_0 = arith.constant 0 : i32
    %c0_i32_1 = arith.constant 0 : i32
    return %arg1, %c0_i32, %c0_i32_0 : i32, i32, i32
  }
  func.func @transform_2(%arg0: i32, %arg1: i32, %arg2: memref<2xf32, #tpu.memory_space<smem>>) -> (i32, i32, i32) {
    %c0_i32 = arith.constant 0 : i32
    %c0_i32_0 = arith.constant 0 : i32
    %c0_i32_1 = arith.constant 0 : i32
    return %arg1, %c0_i32, %c0_i32_0 : i32, i32, i32
  }
  func.func @transform_3(%arg0: i32, %arg1: i32, %arg2: memref<2xf32, #tpu.memory_space<smem>>) -> (i32, i32, i32) {
    %c0_i32 = arith.constant 0 : i32
    %c0_i32_0 = arith.constant 0 : i32
    %c0_i32_1 = arith.constant 0 : i32
    return %arg1, %c0_i32, %c0_i32_0 : i32, i32, i32
  }
  func.func @transform_4(%arg0: i32, %arg1: i32, %arg2: memref<2xf32, #tpu.memory_space<smem>>) -> (i32, i32, i32) {
    %c0_i32 = arith.constant 0 : i32
    %c0_i32_0 = arith.constant 0 : i32
    %c0_i32_1 = arith.constant 0 : i32
    return %arg1, %c0_i32, %c0_i32_0 : i32, i32, i32
  }
  func.func @transform_5(%arg0: i32, %arg1: i32, %arg2: memref<2xf32, #tpu.memory_space<smem>>) -> (i32, i32, i32) {
    %c0_i32 = arith.constant 0 : i32
    %c0_i32_0 = arith.constant 0 : i32
    %c0_i32_1 = arith.constant 0 : i32
    return %arg1, %c0_i32, %c0_i32_0 : i32, i32, i32
  }
  func.func @transform_6(%arg0: i32, %arg1: i32, %arg2: memref<2xf32, #tpu.memory_space<smem>>) -> (i32, i32) {
    %c0_i32 = arith.constant 0 : i32
    %c0_i32_0 = arith.constant 0 : i32
    return %arg0, %c0_i32 : i32, i32
  }
}

</mosaic_0001>

<bundles_post_ra>
// kernel: tpu_custom_call.1
= control target key start
LH: loop header
LB: loop body
LE: loop exit
PB: predicated region body
PF: predicated region fallthrough
CT: control target
= control target key end

     0   :  { %s2183_s0 = inlined_call_operand.hbm [shape: f32[2], index: 0, kind: input, shape index: {}]   ;;  %s2184_s1 = inlined_call_operand.hbm [shape: f32[8,128], index: 1, kind: input, shape index: {}]   ;;  %s2185_s2 = inlined_call_operand.hbm [shape: bf16[2,128,128], index: 2, kind: input, shape index: {}]   ;;  %s2186_s3 = inlined_call_operand.hbm [shape: bf16[2,128,128], index: 3, kind: input, shape index: {}]   ;;  %s2187_s4 = inlined_call_operand.hbm [shape: bf16[2,128,256], index: 4, kind: input, shape index: {}]   ;;  %s2188_s5 = inlined_call_operand.hbm [shape: bf16[2,256,128], index: 5, kind: input, shape index: {}]   ;;  %s2189_s6 = inlined_call_operand.hbm [shape: f32[2,8,256], index: 6, kind: input, shape index: {}]   ;;  %s2190_s7 = inlined_call_operand.hbm [shape: f32[8,128], index: 7, kind: output, shape index: {}]  }
   0x1   :  { %s1734_s26 = scalar_lea.hbm %s2183_s0, 16 }
   0x2   :  { %p1735_p0 = scmp.ne.s32.totalorder %s2183_s0, %s1734_s26  ;;  %p1738_p1 = scmp.lt.u32.totalorder %s1734_s26, %s2183_s0 }
   0x4   :  { %p1740_p2 = pnand %p1738_p1, %p1735_p0 }
   0x6   :  { %1743 = shalt.err (!%p1740_p2)  }
   0x7   :  { %s1910_s8 = smov [#allocation3]  }
   0x8   :  { %13 = dma.hbm_to_smem %s2183_s0, 16, %s1910_s8, [#allocation2] }
   0x9   :  { %1898 = dma.done.wait [#allocation2], 16 }
   0xa   :  { %1899 = vsyncadd [#allocation2], 4294967280 }
   0xb   :  { %15 = sfence }
   0xc   :  { %16 = vsyncpa [#allocation5], 0 }
   0xd   :  { %17 = vsyncpa [#allocation8], 0 }
   0xe   :  { %18 = vsyncpa [#allocation11], 0 }
   0xf   :  { %19 = vsyncpa [#allocation14], 0 }
  0x10   :  { %20 = vsyncpa [#allocation6], 0  ;;  %s1911_s11 = smov [#allocation7]   ;;  %s1744_s15 = scalar_lea.hbm %s2185_s2, 2048 }
  0x11   :  { %s36_s12 = sshll.u32 %s1911_s11, 4  ;;  %p1745_p3 = scmp.ne.s32.totalorder %s2185_s2, %s1744_s15  ;;  %s37_s12 = int_to_ptr.vmem [resolvable:$true] %s36_s12 }
  0x12   :  { %p1748_p4 = scmp.lt.u32.totalorder %s1744_s15, %s2185_s2 }
  0x14   :  { %p1750_p5 = pnand %p1748_p4, %p1745_p3 }
  0x16   :  { %1753 = shalt.err (!%p1750_p5)
}
  0x17   :  { %s1754_s19 = scalar_lea.vmem %s37_s12, 2048  ;;  %p1759_p7 = scmp.lt.s32.totalorder %s37_s12, %s37_s12 }
  0x18   :  { %p1755_p6 = scmp.ne.s32.totalorder %s37_s12, %s1754_s19  ;;  %p1760_p8 = scmp.lt.s32.totalorder %s1754_s19, %s1754_s19 }
  0x1a   :  { %p1761_p9 = por %p1760_p8, %p1759_p7 }
  0x1c   :  { %p1762_p10 = pnand %p1761_p9, %p1755_p6 }
  0x1e   :  { %1765 = shalt.err (!%p1762_p10)
}
  0x1f   :  { %s1912_s20 = smov 64   ;;  %s1913_s21 = smov 4  }
  0x20   :  { %42 = dma.hbm_to_vmem [thread:$0]  %s2185_s2, 2048, %s37_s12, [#allocation8], %s1912_s20, %s1912_s20, %s1913_s21  }
  0x21   :  { %s1914_s24 = smov [#allocation10]   ;;  %s1766_s28 = scalar_lea.hbm %s2187_s4, 4096 }
  0x22   :  { %s60_s25 = sshll.u32 %s1914_s24, 4  ;;  %p1767_p11 = scmp.ne.s32.totalorder %s2187_s4, %s1766_s28  ;;  %s61_s25 = int_to_ptr.vmem [resolvable:$true] %s60_s25 }
  0x23   :  { %p1770_p12 = scmp.lt.u32.totalorder %s1766_s28, %s2187_s4 }
  0x25   :  { %p1772_p13 = pnand %p1770_p12, %p1767_p11 }
  0x27   :  { %1775 = shalt.err (!%p1772_p13)
}
  0x28   :  { %s1776_s10 = scalar_lea.vmem %s61_s25, 4096  ;;  %p1781_p1 = scmp.lt.s32.totalorder %s61_s25, %s61_s25 }
  0x29   :  { %p1777_p0 = scmp.ne.s32.totalorder %s61_s25, %s1776_s10  ;;  %p1782_p2 = scmp.lt.s32.totalorder %s1776_s10, %s1776_s10 }
  0x2b   :  { %p1783_p3 = por %p1782_p2, %p1781_p1 }
  0x2d   :  { %p1784_p4 = pnand %p1783_p3, %p1777_p0 }
  0x2f   :  { %1787 = shalt.err (!%p1784_p4)
}
  0x30   :  { %s1915_s2 = smov 128   ;;  %s1916_s11 = smov 8  }
  0x31   :  { %66 = dma.hbm_to_vmem [thread:$0]  %s2187_s4, 4096, %s61_s25, [#allocation11], %s1915_s2, %s1915_s2, %s1916_s11  }
  0x32   :  { %s1917_s14 = smov [#allocation4]   ;;  %s1918_s16 = smov [#allocation9]  }
  0x33   :  { %s27_s15 = sshll.u32 %s1917_s14, 4  ;;  %s48_s17 = sshll.u32 %s1918_s16, 4  ;;  %s28_s15 = int_to_ptr.vmem [resolvable:$true] %s27_s15  ;;  %s2006_s17 = int_to_ptr.vmem [resolvable:$true] %s48_s17 }
  0x34   :  { %s1788_s19 = scalar_lea.hbm %s2184_s1, 128 }
  0x35   :  { %p1789_p5 = scmp.ne.s32.totalorder %s2184_s1, %s1788_s19  ;;  %p1792_p6 = scmp.lt.u32.totalorder %s1788_s19, %s2184_s1 }
  0x37   :  { %p1794_p7 = pnand %p1792_p6, %p1789_p5 }
  0x39   :  { %1797 = shalt.err (!%p1794_p7)
}
  0x3a   :  { %s1798_s4 = scalar_lea.vmem %s28_s15, 128  ;;  %p1803_p9 = scmp.lt.s32.totalorder %s28_s15, %s28_s15 }
  0x3b   :  { %p1799_p8 = scmp.ne.s32.totalorder %s28_s15, %s1798_s4  ;;  %p1804_p10 = scmp.lt.s32.totalorder %s1798_s4, %s1798_s4 }
  0x3d   :  { %p1805_p11 = por %p1804_p10, %p1803_p9 }
  0x3f   :  { %p1806_p12 = pnand %p1805_p11, %p1799_p8 }
  0x41   :  { %1809 = shalt.err (!%p1806_p12)
}
  0x42   :  { %30 = dma.hbm_to_vmem [thread:$0]  %s2184_s1, 128, %s28_s15, [#allocation5]  }
  0x43   :  { %s1810_s30 = scalar_lea.hbm %s2186_s3, 2048 }
  0x44   :  { %p1811_p13 = scmp.ne.s32.totalorder %s2186_s3, %s1810_s30  ;;  %p1814_p0 = scmp.lt.u32.totalorder %s1810_s30, %s2186_s3 }
  0x46   :  { %p1816_p1 = pnand %p1814_p0, %p1811_p13 }
  0x48   :  { %1819 = shalt.err (!%p1816_p1)
}
  0x49   :  { %s1820_s11 = scalar_lea.vmem %s2006_s17, 2048  ;;  %p1825_p3 = scmp.lt.s32.totalorder %s2006_s17, %s2006_s17 }
  0x4a   :  { %p1821_p2 = scmp.ne.s32.totalorder %s2006_s17, %s1820_s11  ;;  %p1826_p4 = scmp.lt.s32.totalorder %s1820_s11, %s1820_s11 }
  0x4c   :  { %p1827_p5 = por %p1826_p4, %p1825_p3 }
  0x4e   :  { %p1828_p6 = pnand %p1827_p5, %p1821_p2 }
  0x50   :  { %1831 = shalt.err (!%p1828_p6)
}
  0x51   :  { %54 = dma.hbm_to_vmem [thread:$0]  %s2186_s3, 2048, %s2006_s17, [#allocation8], %s1912_s20, %s1912_s20, %s1913_s21  }
  0x52   :  { %s1919_s13 = smov [#allocation12]   ;;  %s1920_s15 = smov [#allocation13]  }
  0x53   :  { %s72_s14 = sshll.u32 %s1919_s13, 4  ;;  %s84_s16 = sshll.u32 %s1920_s15, 4  ;;  %s73_s14 = int_to_ptr.vmem [resolvable:$true] %s72_s14  ;;  %s2040_s16 = int_to_ptr.vmem [resolvable:$true] %s84_s16 }
  0x54   :  { %s1832_s19 = scalar_lea.hbm %s2188_s5, 4096 }
  0x55   :  { %p1833_p7 = scmp.ne.s32.totalorder %s2188_s5, %s1832_s19  ;;  %p1836_p8 = scmp.lt.u32.totalorder %s1832_s19, %s2188_s5 }
  0x57   :  { %p1838_p9 = pnand %p1836_p8, %p1833_p7 }
  0x59   :  { %1841 = shalt.err (!%p1838_p9)
}
  0x5a   :  { %s1842_s3 = scalar_lea.vmem %s73_s14, 4096  ;;  %p1847_p11 = scmp.lt.s32.totalorder %s73_s14, %s73_s14 }
  0x5b   :  { %p1843_p10 = scmp.ne.s32.totalorder %s73_s14, %s1842_s3  ;;  %p1848_p12 = scmp.lt.s32.totalorder %s1842_s3, %s1842_s3 }
  0x5d   :  { %p1849_p13 = por %p1848_p12, %p1847_p11 }
  0x5f   :  { %p1850_p0 = pnand %p1849_p13, %p1843_p10 }
  0x61   :  { %1853 = shalt.err (!%p1850_p0)
}
  0x62   :  { %78 = dma.hbm_to_vmem [thread:$0]  %s2188_s5, 4096, %s73_s14, [#allocation11], %s1912_s20, %s1912_s20, %s1913_s21  }
  0x63   :  { %s1854_s28 = scalar_lea.hbm %s2189_s6, 512 }
  0x64   :  { %p1855_p1 = scmp.ne.s32.totalorder %s2189_s6, %s1854_s28  ;;  %p1858_p2 = scmp.lt.u32.totalorder %s1854_s28, %s2189_s6 }
  0x66   :  { %p1860_p3 = pnand %p1858_p2, %p1855_p1 }
  0x68   :  { %1863 = shalt.err (!%p1860_p3)
}
  0x69   :  { %s1864_s10 = scalar_lea.vmem %s2040_s16, 512  ;;  %p1869_p5 = scmp.lt.s32.totalorder %s2040_s16, %s2040_s16 }
  0x6a   :  { %p1865_p4 = scmp.ne.s32.totalorder %s2040_s16, %s1864_s10  ;;  %p1870_p6 = scmp.lt.s32.totalorder %s1864_s10, %s1864_s10 }
  0x6c   :  { %p1871_p7 = por %p1870_p6, %p1869_p5 }
  0x6e   :  { %p1872_p8 = pnand %p1871_p7, %p1865_p4 }
  0x70   :  { %1875 = shalt.err (!%p1872_p8)
}
  0x71   :  { %s1921_s5 = smov 256   ;;  %s1922_s20 = smov 16  }
  0x72   :  { %90 = dma.hbm_to_vmem [thread:$0]  %s2189_s6, 512, %s2040_s16, [#allocation14], %s1921_s5, %s1921_s5, %s1922_s20  }
  0x73   :  { %1900 = dma.done.wait [#allocation5], 128  }
  0x74   :  { %1901 = vsyncadd [#allocation5], 4294967168 }
  0x75   :  { %1902 = dma.done.wait [#allocation8], 4096  }
  0x76   :  { %1903 = vsyncadd [#allocation8], 4294963200 }
  0x77   :  { %1904 = dma.done.wait [#allocation11], 8192  }
  0x78   :  { %1905 = vsyncadd [#allocation11], 4294959104 }
  0x79   :  { %1906 = dma.done.wait [#allocation14], 512  }
  0x7a   :  { %1907 = vsyncadd [#allocation14], 4294966784  ;;  %v1923_v0 = vmov 0.0   ;;  %vm1924_vm0 = vmmov 0   ;;  %v1602_v1 = vld [vmem:[#allocation7] sm:$0xff]   ;;  %v1603_v2 = vld [vmem:[#allocation7 + $0x8] sm:$0xff]   ;;  %v397_v60 = vlaneseq }
  0x7b   :  { %1505 = vmatprep.subr.bf16.mxu0 %v1923_v0  ;;  %1521 = vmatprep.mubr.msk.bf16.mxu0 %vm1924_vm0, %v1923_v0  ;;  %v1604_v3 = vld [vmem:[#allocation7 + $0x10] sm:$0xff]   ;;  %v1610_v4 = vld [vmem:[#allocation9] sm:$0xff]   ;;  %v1605_v5 = vld [vmem:[#allocation7 + $0x18] sm:$0xff]   ;;  %s200_s6 = sld [smem:[#allocation3]]  ;;  %v1925_v53 = vmov 0   ;;  %s1376_s1 = sld [smem:[#allocation3 + $0x1]] }
  0x7c   :  { %1525 = vmatprep.subr.bf16.mxu1 %v1923_v0  ;;  %1541 = vmatprep.mubr.msk.bf16.mxu1 %vm1924_vm0, %v1923_v0  ;;  %v1611_v6 = vld [vmem:[#allocation9 + $0x8] sm:$0xff]   ;;  %v1606_v7 = vld [vmem:[#allocation7 + $0x20] sm:$0xff]   ;;  %v1612_v8 = vld [vmem:[#allocation9 + $0x10] sm:$0xff]   ;;  %v2096_v62 = vshrl.u32 %v397_v60, 7  ;;  %s1926_s13 = smov [#allocation15]  }
  0x7d   :  { %1506 = vmatpush3.bf16.msra.mxu0 %v1602_v1  ;;  %1526 = vmatpush3.bf16.msra.mxu1 %v1610_v4  ;;  %v1607_v9 = vld [vmem:[#allocation7 + $0x28] sm:$0xff]   ;;  %v1613_v10 = vld [vmem:[#allocation9 + $0x18] sm:$0xff]   ;;  %v1608_v11 = vld [vmem:[#allocation7 + $0x30] sm:$0xff]   ;;  %s1316_s14 = sshll.u32 %s1926_s13, 4  ;;  %s1317_s14 = int_to_ptr.vmem [resolvable:$true] %s1316_s14 }
  0x7e   :  { %1507 = vmatprep.subr.bf16.mxu0 %v1923_v0  ;;  %1527 = vmatprep.subr.bf16.mxu1 %v1923_v0  ;;  %v1609_v12 = vld [vmem:[#allocation7 + $0x38] sm:$0xff]   ;;  %v1614_v15 = vld [vmem:[#allocation9 + $0x20] sm:$0xff]   ;;  %v1615_v16 = vld [vmem:[#allocation9 + $0x28] sm:$0xff]   ;;  %v399_v63 = vsub.s32 0, %v2096_v62  ;;  %s1876_s15 = scalar_lea.vmem %s1317_s14, 128  ;;  %p1881_p10 = scmp.lt.s32.totalorder %s1317_s14, %s1317_s14 }
  0x7f   :  { %v114_v13 = vld [vmem:[#allocation4] sm:$0xff]  ;;  %v1616_v17 = vld [vmem:[#allocation9 + $0x30] sm:$0xff]   ;;  %v1618_v33 = vld [vmem:[#allocation10] ss:$8 sps:$4 sm:$0xff]   ;;  %p1877_p9 = scmp.ne.s32.totalorder %s1317_s14, %s1876_s15  ;;  %p1882_p11 = scmp.lt.s32.totalorder %s1876_s15, %s1876_s15 }
  0x80   :  { %v201_v14 = vpack.c.bf16 %v114_v13, %v114_v13  ;;  %v1617_v18 = vld [vmem:[#allocation9 + $0x38] sm:$0xff]   ;;  %v1620_v34 = vld [vmem:[#allocation10 + $0x4] ss:$8 sps:$4 sm:$0xff]   ;;  %v1624_v38 = vld [vmem:[#allocation10 + $0x20] ss:$8 sps:$4 sm:$0xff]  }
  0x81   :  { %1508 = vmatpush3.bf16.msra.mxu0 %v1603_v2  ;;  %1528 = vmatpush3.bf16.msra.mxu1 %v1611_v6  ;;  %s290_s11 = smul.f32 0.1, %s200_s6  ;;  %v1623_v35 = vld [vmem:[#allocation10 + $0x14] ss:$8 sps:$4 sm:$0xff]   ;;  %v1621_v36 = vld [vmem:[#allocation10 + $0x10] ss:$8 sps:$4 sm:$0xff]   ;;  %p1883_p12 = por %p1882_p11, %p1881_p10 }
  0x82   :  { %1509 = vmatprep.subr.bf16.mxu0 %v1923_v0  ;;  %1529 = vmatprep.subr.bf16.mxu1 %v1923_v0  ;;  %v1626_v37 = vld [vmem:[#allocation10 + $0x24] ss:$8 sps:$4 sm:$0xff]   ;;  %v1629_v43 = vld [vmem:[#allocation10 + $0x34] ss:$8 sps:$4 sm:$0xff]   ;;  %v1627_v44 = vld [vmem:[#allocation10 + $0x30] ss:$8 sps:$4 sm:$0xff]  }
  0x83   :  { %v292_v23 = vstv %s290_s11  ;;  %v1632_v45 = vld [vmem:[#allocation10 + $0x44] ss:$8 sps:$4 sm:$0xff]   ;;  %v1630_v46 = vld [vmem:[#allocation10 + $0x40] ss:$8 sps:$4 sm:$0xff]   ;;  %v1635_v47 = vld [vmem:[#allocation10 + $0x54] ss:$8 sps:$4 sm:$0xff]   ;;  %p1884_p13 = pnand %p1883_p12, %p1877_p9 }
  0x84   :  { %v1633_v48 = vld [vmem:[#allocation10 + $0x50] ss:$8 sps:$4 sm:$0xff]   ;;  %v1638_v49 = vld [vmem:[#allocation10 + $0x64] ss:$8 sps:$4 sm:$0xff]   ;;  %v1636_v50 = vld [vmem:[#allocation10 + $0x60] ss:$8 sps:$4 sm:$0xff]  }
  0x85   :  { %1510 = vmatpush3.bf16.msra.mxu0 %v1604_v3  ;;  %1530 = vmatpush3.bf16.msra.mxu1 %v1612_v8  ;;  %v1641_v51 = vld [vmem:[#allocation10 + $0x74] ss:$8 sps:$4 sm:$0xff]   ;;  %v1639_v52 = vld [vmem:[#allocation10 + $0x70] ss:$8 sps:$4 sm:$0xff]   ;;  %v1642_v54 = vld [vmem:[#allocation12 + $0x40] sm:$0xff]   ;;  %v404_v2 = vsub.s32 1, %v2096_v62 }
  0x86   :  { %1511 = vmatprep.subr.bf16.mxu0 %v1923_v0  ;;  %1531 = vmatprep.subr.bf16.mxu1 %v1923_v0  ;;  %v1643_v55 = vld [vmem:[#allocation12] sm:$0xff]   ;;  %v1644_v56 = vld [vmem:[#allocation12 + $0x48] sm:$0xff]   ;;  %v1660_v60 = vld [vmem:[#allocation7 + $0x50] sm:$0xff]   ;;  %s889_s12 = smul.f32 0.1, %s1376_s1 }
  0x87   :  { %v1645_v57 = vld [vmem:[#allocation12 + $0x8] sm:$0xff]   ;;  %v2099_v1 = vld [vmem:[#allocation13] sm:$0xff] }
  0x88   :  { %v400_v3 = vrot.slane %v2099_v1, %v399_v63  ;;  %v405_v6 = vrot.slane %v2099_v1, %v404_v2 }
  0x89   :  { %1512 = vmatpush3.bf16.msra.mxu0 %v1605_v5  ;;  %1532 = vmatpush3.bf16.msra.mxu1 %v1613_v10  ;;  %v1646_v10 = vld [vmem:[#allocation12 + $0x50] sm:$0xff]  }
  0x8a   :  { %1513 = vmatprep.subr.bf16.mxu0 %v1923_v0  ;;  %1533 = vmatprep.subr.bf16.mxu1 %v1923_v0 }
  0x8d   :  { %1514 = vmatpush3.bf16.msra.mxu0 %v1606_v7  ;;  %1534 = vmatpush3.bf16.msra.mxu1 %v1614_v15  ;;  %v1651_v15 = vld [vmem:[#allocation12 + $0x20] sm:$0xff]  }
  0x8e   :  { %1515 = vmatprep.subr.bf16.mxu0 %v1923_v0  ;;  %1535 = vmatprep.subr.bf16.mxu1 %v1923_v0 }
  0x91   :  { %1516 = vmatpush3.bf16.msra.mxu0 %v1607_v9  ;;  %1536 = vmatpush3.bf16.msra.mxu1 %v1615_v16  ;;  %v1652_v16 = vld [vmem:[#allocation12 + $0x68] sm:$0xff]  }
  0x92   :  { %1517 = vmatprep.subr.bf16.mxu0 %v1923_v0  ;;  %1537 = vmatprep.subr.bf16.mxu1 %v1923_v0 }
  0x95   :  { %1518 = vmatpush3.bf16.msra.mxu0 %v1608_v11  ;;  %1538 = vmatpush3.bf16.msra.mxu1 %v1616_v17  ;;  %v1647_v11 = vld [vmem:[#allocation12 + $0x10] sm:$0xff]   ;;  %v1653_v17 = vld [vmem:[#allocation12 + $0x28] sm:$0xff]  }
  0x96   :  { %1519 = vmatprep.subr.bf16.mxu0 %v1923_v0  ;;  %1539 = vmatprep.subr.bf16.mxu1 %v1923_v0 }
  0x99   :  { %1520 = vmatpush3.bf16.msra.mxu0 %v1609_v12  ;;  %1540 = vmatpush3.bf16.msra.mxu1 %v1617_v18  ;;  %v1648_v12 = vld [vmem:[#allocation12 + $0x58] sm:$0xff]   ;;  %v1654_v18 = vld [vmem:[#allocation12 + $0x70] sm:$0xff]  }
  0x9a   :  { %496 = vmatprep.subr.bf16.mxu0 %v1620_v34  ;;  %1443 = vmatprep.subr.bf16.mxu1 %v1642_v54  ;;  %v1658_v54 = vld [vmem:[#allocation7 + $0x40] sm:$0xff]  }
  0x9c   :  { %1522 = vmatmul.mubr.bf16.vlgmr.msra.gmra.mrb[0].mxu0 %v201_v14  ;;  %v1650_v14 = vld [vmem:[#allocation12 + $0x60] sm:$0xff]  }
  0x9d   :  { %497 = vmatpush1.bf16.msra.mxu0 %v1618_v33  ;;  %528 = vmatprep.mubr.bf16.mxu0 %v1925_v53 }
  0x9e   :  { %498 = vmatprep.subr.bf16.mxu0 %v1623_v35 }
  0xa1   :  { %499 = vmatpush1.bf16.msra.mxu0 %v1621_v36 }
  0xa2   :  { %500 = vmatprep.subr.bf16.mxu0 %v1626_v37 }
  0xa5   :  { %501 = vmatpush1.bf16.msra.mxu0 %v1624_v38 }
  0xa6   :  { %502 = vmatprep.subr.bf16.mxu0 %v1629_v43 }
  0xa9   :  { %503 = vmatpush1.bf16.msra.mxu0 %v1627_v44  ;;  %v551_v44 = vsub.s32 4, %v2096_v62 }
  0xaa   :  { %504 = vmatprep.subr.bf16.mxu0 %v1632_v45 }
  0xad   :  { %505 = vmatpush1.bf16.msra.mxu0 %v1630_v46  ;;  %v552_v46 = vrot.slane %v2099_v1, %v551_v44 }
  0xae   :  { %506 = vmatprep.subr.bf16.mxu0 %v1635_v47 }
  0xb1   :  { %507 = vmatpush1.bf16.msra.mxu0 %v1633_v48 }
  0xb2   :  { %508 = vmatprep.subr.bf16.mxu0 %v1638_v49 }
  0xb5   :  { %509 = vmatpush1.bf16.msra.mxu0 %v1636_v50 }
  0xb6   :  { %510 = vmatprep.subr.bf16.mxu0 %v1641_v51 }
  0xb9   :  { %511 = vmatpush1.bf16.msra.mxu0 %v1639_v52 }
  0xba   :  { %1545 = vmatprep.subr.bf16.mxu0 %v1923_v0 }
 0x16f   :  { %v284_v19 = vpop.f32.mrb[0].mxu0 }
 0x170   :  { %1714 = vtanh.f32 %v284_v19  ;;  %v1523_v20 = vpop.f32.mrb[1].mxu0 }
 0x171   :  { %v287_v21 = vpop.f32.mrb[2].mxu0  ;;  %v1656_v20 = vld [vmem:[#allocation12 + $0x78] sm:$0xff]  }
 0x172   :  { %v1524_v22 = vpop.f32.mrb[3].mxu0  ;;  %v1657_v21 = vld [vmem:[#allocation12 + $0x38] sm:$0xff]  }
 0x173   :  { %v2116_v22 = vsub.s32 5, %v2096_v62 }
 0x17a   :  { %v1715_v24 = vpop.eup %1714 }
 0x17b   :  { %v293_v25 = vmul.f32 %v1715_v24, %v292_v23  ;;  %v198_v23 = vld [vmem:[#allocation13 + $0x8] sm:$0xff]  ;;  %v411_v24 = vrot.slane %v2099_v1, %v2116_v22 }
 0x17d   :  { %v294_v26 = vadd.f32 %v293_v25, %v284_v19  ;;  %v1655_v19 = vld [vmem:[#allocation12 + $0x30] sm:$0xff]   ;;  %v415_v25 = vrot.slane %v198_v23, %v2116_v22 }
 0x17f   :  { %v295_v27 = vpack.c.bf16 %v294_v26, %v294_v26 }
 0x181   :  { %1542 = vmatmul.mubr.bf16.vlgmr.msra.gmra.mrb[0].mxu1 %v295_v27 }
 0x182   :  { %1444 = vmatpush3.bf16.msra.mxu1 %v1643_v55  ;;  %v1659_v55 = vld [vmem:[#allocation7 + $0x48] sm:$0xff]  }
 0x183   :  { %1445 = vmatprep.subr.bf16.mxu1 %v1644_v56 }
 0x186   :  { %1446 = vmatpush3.bf16.msra.mxu1 %v1645_v57 }
 0x187   :  { %1447 = vmatprep.subr.bf16.mxu1 %v1646_v10  ;;  %v1669_v10 = vld [vmem:[#allocation9 + $0x58] sm:$0xff]  }
 0x18a   :  { %1448 = vmatpush3.bf16.msra.mxu1 %v1647_v11 }
 0x18b   :  { %1449 = vmatprep.subr.bf16.mxu1 %v1648_v12 }
 0x254   :  { %v378_v28 = vpop.f32.mrb[0].mxu1 }
 0x255   :  { %v384_v29 = vadd.f32 %v378_v28, %v114_v13  ;;  %v1543_v30 = vpop.f32.mrb[1].mxu1  ;;  %v1649_v13 = vld [vmem:[#allocation12 + $0x18] sm:$0xff]  }
 0x256   :  { %v381_v31 = vpop.f32.mrb[2].mxu1  ;;  %1450 = vmatpush3.bf16.msra.mxu1 %v1649_v13 }
 0x257   :  { %385 = vadd.xlane.f32.xlu0 %v384_v29  ;;  %v1544_v32 = vpop.f32.mrb[3].mxu1  ;;  %1451 = vmatprep.subr.bf16.mxu1 %v1650_v14  ;;  %v703_v14 = vsub.s32 2, %v2096_v62 }
 0x25a   :  { %1452 = vmatpush3.bf16.msra.mxu1 %v1651_v15  ;;  %v708_v15 = vsub.s32 3, %v2096_v62 }
 0x25b   :  { %1453 = vmatprep.subr.bf16.mxu1 %v1652_v16  ;;  %v704_v16 = vrot.slane %v2099_v1, %v703_v14 }
 0x25e   :  { %1454 = vmatpush3.bf16.msra.mxu1 %v1653_v17 }
 0x25f   :  { %1455 = vmatprep.subr.bf16.mxu1 %v1654_v18 }
 0x262   :  { %1456 = vmatpush3.bf16.msra.mxu1 %v1655_v19  ;;  %v709_v19 = vrot.slane %v2099_v1, %v708_v15 }
 0x263   :  { %1457 = vmatprep.subr.bf16.mxu1 %v1656_v20 }
 0x266   :  { %1458 = vmatpush3.bf16.msra.mxu1 %v1657_v21 }
 0x267   :  { %1565 = vmatprep.subr.bf16.mxu1 %v1923_v0 }
 0x2e4   :  { %v386_v39 = vpop.xlane.xlu0 %385 }
 0x2e5   :  { %v388_v40 = vmul.f32 0.0078125, %v386_v39 }
 0x2e7   :  { %v389_v41 = vsub.f32 %v384_v29, %v388_v40 }
 0x2e9   :  { %v390_v42 = vmul.f32 %v389_v41, %v389_v41 }
 0x2eb   :  { %391 = vadd.xlane.f32.xlu0 %v390_v42 }
 0x378   :  { %v392_v58 = vpop.xlane.xlu0 %391 }
 0x379   :  { %v393_v59 = vmul.f32 0.0078125, %v392_v58 }
 0x37b   :  { %v394_v61 = vadd.f32 1e-05, %v393_v59 }
 0x37d   :  { %1716 = vrsqrt.f32 %v394_v61  ;;  %v1661_v61 = vld [vmem:[#allocation7 + $0x58] sm:$0xff]  }
 0x387   :  { %v1717_v4 = vpop.eup %1716 }
 0x388   :  { %v396_v5 = vmul.f32 %v1717_v4, %v389_v41  ;;  %v1663_v4 = vld [vmem:[#allocation7 + $0x68] sm:$0xff]  }
 0x38a   :  { %v401_v7 = vmul.f32 %v400_v3, %v396_v5  ;;  %v1662_v3 = vld [vmem:[#allocation7 + $0x60] sm:$0xff]   ;;  %v1664_v5 = vld [vmem:[#allocation7 + $0x70] sm:$0xff]  }
 0x38c   :  { %v2108_v8 = vadd.f32 %v405_v6, %v401_v7  ;;  %v1665_v6 = vld [vmem:[#allocation7 + $0x78] sm:$0xff]   ;;  %v1666_v7 = vld [vmem:[#allocation9 + $0x40] sm:$0xff]  }
 0x38e   :  { %v407_v9 = vpack.c.bf16 %v2108_v8, %v2108_v8 }
 0x390   :  { %529 = vmatmul.mubr.bf16.vlgmr.msra.gmra.mrb[4].mxu0 %v407_v9  ;;  %v1668_v9 = vld [vmem:[#allocation9 + $0x50] sm:$0xff]  }
 0x391   :  { %1561 = vmatprep.mubr.msk.bf16.mxu0 %vm1924_vm0, %v1923_v0  ;;  %1546 = vmatpush3.bf16.msra.mxu0 %v1658_v54  ;;  %v1686_v54 = vld [vmem:[#allocation10 + $0xc0] ss:$8 sps:$4 sm:$0xff]  }
 0x392   :  { %1547 = vmatprep.subr.bf16.mxu0 %v1923_v0 }
 0x395   :  { %1548 = vmatpush3.bf16.msra.mxu0 %v1659_v55  ;;  %v1691_v55 = vld [vmem:[#allocation10 + $0xd4] ss:$8 sps:$4 sm:$0xff]  }
 0x396   :  { %1549 = vmatprep.subr.bf16.mxu0 %v1923_v0 }
 0x399   :  { %1550 = vmatpush3.bf16.msra.mxu0 %v1660_v60  ;;  %v1695_v60 = vld [vmem:[#allocation10 + $0xf0] ss:$8 sps:$4 sm:$0xff]  }
 0x39a   :  { %1551 = vmatprep.subr.bf16.mxu0 %v1923_v0 }
 0x39d   :  { %1552 = vmatpush3.bf16.msra.mxu0 %v1661_v61  ;;  %v1698_v61 = vld [vmem:[#allocation12 + $0xc0] sm:$0xff]  }
 0x39e   :  { %1553 = vmatprep.subr.bf16.mxu0 %v1923_v0 }
 0x3a1   :  { %1554 = vmatpush3.bf16.msra.mxu0 %v1662_v3  ;;  %v1699_v3 = vld [vmem:[#allocation12 + $0x80] sm:$0xff]  }
 0x3a2   :  { %1555 = vmatprep.subr.bf16.mxu0 %v1923_v0 }
 0x3a5   :  { %1556 = vmatpush3.bf16.msra.mxu0 %v1663_v4  ;;  %v1700_v4 = vld [vmem:[#allocation12 + $0xc8] sm:$0xff]  }
 0x3a6   :  { %1557 = vmatprep.subr.bf16.mxu0 %v1923_v0 }
 0x3a9   :  { %1558 = vmatpush3.bf16.msra.mxu0 %v1664_v5  ;;  %v1701_v5 = vld [vmem:[#allocation12 + $0x88] sm:$0xff]  }
 0x3aa   :  { %1559 = vmatprep.subr.bf16.mxu0 %v1923_v0 }
 0x3ad   :  { %1560 = vmatpush3.bf16.msra.mxu0 %v1665_v6 }
 0x463   :  { %v530_v26 = vpop.f32.mrb[4].mxu0 }
 0x464   :  { %v531_v27 = vadd.f32 %v530_v26, %v411_v24  ;;  %v532_v28 = vpop.f32.mrb[5].mxu0  ;;  %v1670_v24 = vld [vmem:[#allocation9 + $0x60] sm:$0xff]   ;;  %v1672_v26 = vld [vmem:[#allocation9 + $0x70] sm:$0xff]  }
 0x465   :  { %v533_v29 = vadd.f32 %v532_v28, %v415_v25  ;;  %v534_v30 = vpop.f32.mrb[6].mxu0  ;;  %v1671_v25 = vld [vmem:[#allocation9 + $0x68] sm:$0xff]  }
 0x466   :  { %v539_v31 = vmul.f32 0.70710677, %v531_v27  ;;  %v535_v32 = vpop.f32.mrb[7].mxu0  ;;  %v537_v36 = vmul.f32 0.5, %v531_v27  ;;  %v1673_v27 = vld [vmem:[#allocation9 + $0x78] sm:$0xff]   ;;  %v891_v30 = vstv %s889_s12 }
 0x467   :  { %v540_v33 = vmul.f32 0.70710677, %v533_v29  ;;  %v538_v38 = vmul.f32 0.5, %v533_v29 }
 0x468   :  { %1718 = verf.f32 %v539_v31 }
 0x469   :  { %1720 = verf.f32 %v540_v33 }
 0x472   :  { %v1719_v34 = vpop.eup %1718 }
 0x473   :  { %v1721_v35 = vpop.eup %1720  ;;  %v543_v37 = vadd.f32 1.0, %v1719_v34 }
 0x474   :  { %v544_v39 = vadd.f32 1.0, %v1721_v35 }
 0x475   :  { %v545_v40 = vmul.f32 %v543_v37, %v537_v36 }
 0x476   :  { %v546_v41 = vmul.f32 %v544_v39, %v538_v38  ;;  %v1674_v39 = vld [vmem:[#allocation10 + $0x80] ss:$8 sps:$4 sm:$0xff]  }
 0x477   :  { %v547_v43 = vpack.c.bf16 %v545_v40, %v545_v40  ;;  %v1676_v40 = vld [vmem:[#allocation10 + $0x84] ss:$8 sps:$4 sm:$0xff]  }
 0x478   :  { %v548_v42 = vpack.c.bf16 %v546_v41, %v546_v41  ;;  %v1679_v41 = vld [vmem:[#allocation10 + $0x94] ss:$8 sps:$4 sm:$0xff]   ;;  %1094 = vmatprep.subr.bf16.mxu0 %v1676_v40 }
 0x47a   :  { %681 = vmatprep.mubr.bf16.mxu1 %v548_v42  ;;  %v1677_v42 = vld [vmem:[#allocation10 + $0x90] ss:$8 sps:$4 sm:$0xff]  }
 0x47b   :  { %682 = vmatmul.mubr.bf16.vlgmr.msra.gmra.mrb[4].mxu1 %v547_v43  ;;  %v1682_v43 = vld [vmem:[#allocation10 + $0xa4] ss:$8 sps:$4 sm:$0xff]  }
 0x47c   :  { %1581 = vmatprep.mubr.msk.bf16.mxu1 %vm1924_vm0, %v1923_v0  ;;  %1566 = vmatpush3.bf16.msra.mxu1 %v1666_v7 }
 0x47d   :  { %1567 = vmatprep.subr.bf16.mxu1 %v1923_v0 }
 0x54e   :  { %v1459_v45 = vpop.f32.mrb[4].mxu1 }
 0x54f   :  { %v1460_v47 = vpop.f32.mrb[5].mxu1 }
 0x550   :  { %v1461_v48 = vadd.f32 %v1460_v47, %v1459_v45  ;;  %v1462_v49 = vpop.f32.mrb[6].mxu1  ;;  %v1680_v45 = vld [vmem:[#allocation10 + $0xa0] ss:$8 sps:$4 sm:$0xff]  }
 0x551   :  { %v1463_v50 = vpop.f32.mrb[7].mxu1 }
 0x552   :  { %v684_v51 = vadd.f32 %v1461_v48, %v552_v46  ;;  %v1685_v50 = vld [vmem:[#allocation10 + $0xb4] ss:$8 sps:$4 sm:$0xff]  }
 0x554   :  { %v689_v52 = vadd.f32 %v684_v51, %v2108_v8  ;;  %v1667_v8 = vld [vmem:[#allocation9 + $0x48] sm:$0xff]   ;;  %v1683_v51 = vld [vmem:[#allocation10 + $0xb0] ss:$8 sps:$4 sm:$0xff]  }
 0x555   :  { %1568 = vmatpush3.bf16.msra.mxu1 %v1667_v8 }
 0x556   :  { %690 = vadd.xlane.f32.xlu1 %v689_v52  ;;  %1569 = vmatprep.subr.bf16.mxu1 %v1923_v0 }
 0x559   :  { %1570 = vmatpush3.bf16.msra.mxu1 %v1668_v9  ;;  %v2151_v9 = vld [vmem:[#allocation13 + $0x10] sm:$0xff] }
 0x55a   :  { %1571 = vmatprep.subr.bf16.mxu1 %v1923_v0 }
 0x55d   :  { %1572 = vmatpush3.bf16.msra.mxu1 %v1669_v10  ;;  %v998_v10 = vrot.slane %v2151_v9, %v399_v63  ;;  %v1707_v63 = vld [vmem:[#allocation12 + $0xa0] sm:$0xff]  }
 0x55e   :  { %1573 = vmatprep.subr.bf16.mxu1 %v1923_v0 }
 0x561   :  { %1574 = vmatpush3.bf16.msra.mxu1 %v1670_v24  ;;  %v1706_v24 = vld [vmem:[#allocation12 + $0xe0] sm:$0xff]  }
 0x562   :  { %1575 = vmatprep.subr.bf16.mxu1 %v1923_v0 }
 0x565   :  { %1576 = vmatpush3.bf16.msra.mxu1 %v1671_v25  ;;  %v1708_v25 = vld [vmem:[#allocation12 + $0xe8] sm:$0xff]  }
 0x566   :  { %1577 = vmatprep.subr.bf16.mxu1 %v1923_v0 }
 0x569   :  { %1578 = vmatpush3.bf16.msra.mxu1 %v1672_v26  ;;  %v1709_v26 = vld [vmem:[#allocation12 + $0xa8] sm:$0xff]  }
 0x56a   :  { %1579 = vmatprep.subr.bf16.mxu1 %v1923_v0 }
 0x56d   :  { %1580 = vmatpush3.bf16.msra.mxu1 %v1673_v27  ;;  %v1711_v27 = vld [vmem:[#allocation12 + $0xb0] sm:$0xff]  }
 0x56e   :  { %1483 = vmatprep.subr.bf16.mxu1 %v1698_v61 }
 0x5e3   :  { %v691_v56 = vpop.xlane.xlu1 %690 }
 0x5e4   :  { %v692_v57 = vmul.f32 0.0078125, %v691_v56  ;;  %v1689_v56 = vld [vmem:[#allocation10 + $0xd0] ss:$8 sps:$4 sm:$0xff]  }
 0x5e6   :  { %v693_v58 = vsub.f32 %v689_v52, %v692_v57  ;;  %v1688_v52 = vld [vmem:[#allocation10 + $0xc4] ss:$8 sps:$4 sm:$0xff]  }
 0x5e7   :  { %v1694_v57 = vld [vmem:[#allocation10 + $0xe4] ss:$8 sps:$4 sm:$0xff]  }
 0x5e8   :  { %v694_v59 = vmul.f32 %v693_v58, %v693_v58 }
 0x5ea   :  { %695 = vadd.xlane.f32.xlu1 %v694_v59  ;;  %v1697_v59 = vld [vmem:[#allocation10 + $0xf4] ss:$8 sps:$4 sm:$0xff]  }
 0x677   :  { %v696_v11 = vpop.xlane.xlu1 %695 }
 0x678   :  { %v697_v12 = vmul.f32 0.0078125, %v696_v11 }
 0x67a   :  { %v698_v13 = vadd.f32 1e-05, %v697_v12 }
 0x67c   :  { %1722 = vrsqrt.f32 %v698_v13  ;;  %v1003_v13 = vrot.slane %v2151_v9, %v404_v2  ;;  %v1710_v2 = vld [vmem:[#allocation12 + $0xf0] sm:$0xff]  }
 0x686   :  { %v1723_v17 = vpop.eup %1722 }
 0x687   :  { %v700_v18 = vmul.f32 %v1723_v17, %v693_v58  ;;  %v1692_v58 = vld [vmem:[#allocation10 + $0xe0] ss:$8 sps:$4 sm:$0xff]  }
 0x689   :  { %v705_v20 = vmul.f32 %v704_v16, %v700_v18 }
 0x68b   :  { %v710_v21 = vadd.f32 %v709_v19, %v705_v20  ;;  %v1702_v19 = vld [vmem:[#allocation12 + $0xd0] sm:$0xff]  }
 0x68c   :  { %v1703_v20 = vld [vmem:[#allocation12 + $0x90] sm:$0xff]  }
 0x68d   :  { %v800_v23 = vpack.c.bf16 %v710_v21, %v710_v21 }
 0x68f   :  { %1562 = vmatmul.mubr.bf16.vlgmr.msra.gmra.mrb[8].mxu0 %v800_v23  ;;  %v1705_v23 = vld [vmem:[#allocation12 + $0x98] sm:$0xff]  }
 0x690   :  { %1126 = vmatprep.mubr.bf16.mxu0 %v1925_v53  ;;  %1095 = vmatpush1.bf16.msra.mxu0 %v1674_v39 }
 0x691   :  { %1096 = vmatprep.subr.bf16.mxu0 %v1679_v41 }
 0x694   :  { %1097 = vmatpush1.bf16.msra.mxu0 %v1677_v42 }
 0x695   :  { %1098 = vmatprep.subr.bf16.mxu0 %v1682_v43 }
 0x698   :  { %1099 = vmatpush1.bf16.msra.mxu0 %v1680_v45 }
 0x699   :  { %1100 = vmatprep.subr.bf16.mxu0 %v1685_v50 }
 0x69c   :  { %1101 = vmatpush1.bf16.msra.mxu0 %v1683_v51 }
 0x69d   :  { %1102 = vmatprep.subr.bf16.mxu0 %v1688_v52 }
 0x6a0   :  { %1103 = vmatpush1.bf16.msra.mxu0 %v1686_v54 }
 0x6a1   :  { %1104 = vmatprep.subr.bf16.mxu0 %v1691_v55 }
 0x6a4   :  { %1105 = vmatpush1.bf16.msra.mxu0 %v1689_v56 }
 0x6a5   :  { %1106 = vmatprep.subr.bf16.mxu0 %v1694_v57 }
 0x6a8   :  { %1107 = vmatpush1.bf16.msra.mxu0 %v1692_v58 }
 0x6a9   :  { %1108 = vmatprep.subr.bf16.mxu0 %v1697_v59 }
 0x6ac   :  { %1109 = vmatpush1.bf16.msra.mxu0 %v1695_v60 }
 0x762   :  { %v883_v1 = vpop.f32.mrb[8].mxu0 }
 0x763   :  { %1724 = vtanh.f32 %v883_v1  ;;  %v1563_v28 = vpop.f32.mrb[9].mxu0 }
 0x764   :  { %v886_v29 = vpop.f32.mrb[10].mxu0  ;;  %v1713_v28 = vld [vmem:[#allocation12 + $0xb8] sm:$0xff]  }
 0x765   :  { %v1564_v53 = vpop.f32.mrb[11].mxu0  ;;  %v797_v29 = vld [vmem:[#allocation13 + $0x18] sm:$0xff] }
 0x766   :  { %v1009_v53 = vrot.slane %v2151_v9, %v2116_v22 }
 0x76d   :  { %v1725_v31 = vpop.eup %1724 }
 0x76e   :  { %v892_v32 = vmul.f32 %v1725_v31, %v891_v30  ;;  %v1013_v30 = vrot.slane %v797_v29, %v2116_v22 }
 0x770   :  { %v893_v33 = vadd.f32 %v892_v32, %v883_v1  ;;  %v1712_v1 = vld [vmem:[#allocation12 + $0xf8] sm:$0xff]  }
 0x772   :  { %v894_v34 = vpack.c.bf16 %v893_v33, %v893_v33 }
 0x774   :  { %1582 = vmatmul.mubr.bf16.vlgmr.msra.gmra.mrb[8].mxu1 %v894_v34 }
 0x775   :  { %1484 = vmatpush3.bf16.msra.mxu1 %v1699_v3 }
 0x776   :  { %1485 = vmatprep.subr.bf16.mxu1 %v1700_v4 }
 0x779   :  { %1486 = vmatpush3.bf16.msra.mxu1 %v1701_v5 }
 0x77a   :  { %1487 = vmatprep.subr.bf16.mxu1 %v1702_v19 }
 0x77d   :  { %1488 = vmatpush3.bf16.msra.mxu1 %v1703_v20 }
 0x847   :  { %v977_v35 = vpop.f32.mrb[8].mxu1 }
 0x848   :  { %v983_v36 = vadd.f32 %v977_v35, %v710_v21  ;;  %v1583_v37 = vpop.f32.mrb[9].mxu1  ;;  %v1704_v21 = vld [vmem:[#allocation12 + $0xd8] sm:$0xff]  }
 0x849   :  { %v980_v38 = vpop.f32.mrb[10].mxu1  ;;  %1489 = vmatprep.subr.bf16.mxu1 %v1704_v21 }
 0x84a   :  { %984 = vadd.xlane.f32.xlu0 %v983_v36  ;;  %v1584_v0 = vpop.f32.mrb[11].mxu1  ;;  %1490 = vmatpush3.bf16.msra.mxu1 %v1705_v23 }
 0x84b   :  { %1491 = vmatprep.subr.bf16.mxu1 %v1706_v24 }
 0x84e   :  { %1492 = vmatpush3.bf16.msra.mxu1 %v1707_v63 }
 0x84f   :  { %1493 = vmatprep.subr.bf16.mxu1 %v1708_v25 }
 0x852   :  { %1494 = vmatpush3.bf16.msra.mxu1 %v1709_v26 }
 0x853   :  { %1495 = vmatprep.subr.bf16.mxu1 %v1710_v2 }
 0x856   :  { %1496 = vmatpush3.bf16.msra.mxu1 %v1711_v27 }
 0x857   :  { %1497 = vmatprep.subr.bf16.mxu1 %v1712_v1 }
 0x85a   :  { %1498 = vmatpush3.bf16.msra.mxu1 %v1713_v28 }
 0x8d7   :  { %v985_v46 = vpop.xlane.xlu0 %984 }
 0x8d8   :  { %v986_v47 = vmul.f32 0.0078125, %v985_v46 }
 0x8da   :  { %v987_v48 = vsub.f32 %v983_v36, %v986_v47 }
 0x8dc   :  { %v988_v49 = vmul.f32 %v987_v48, %v987_v48 }
 0x8de   :  { %989 = vadd.xlane.f32.xlu1 %v988_v49  ;;  %v1150_v49 = vrot.slane %v2151_v9, %v551_v44  ;;  %v1302_v44 = vrot.slane %v2151_v9, %v703_v14 }
 0x96b   :  { %v990_v6 = vpop.xlane.xlu1 %989 }
 0x96c   :  { %v991_v7 = vmul.f32 0.0078125, %v990_v6 }
 0x96e   :  { %v992_v8 = vadd.f32 1e-05, %v991_v7  ;;  %v1307_v7 = vrot.slane %v2151_v9, %v708_v15 }
 0x970   :  { %1726 = vrsqrt.f32 %v992_v8 }
 0x97a   :  { %v1727_v11 = vpop.eup %1726 }
 0x97b   :  { %v994_v12 = vmul.f32 %v1727_v11, %v987_v48 }
 0x97d   :  { %v999_v16 = vmul.f32 %v998_v10, %v994_v12 }
 0x97f   :  { %v1004_v17 = vadd.f32 %v1003_v13, %v999_v16 }
 0x981   :  { %v1005_v18 = vpack.c.bf16 %v1004_v17, %v1004_v17 }
 0x983   :  { %1127 = vmatmul.mubr.bf16.vlgmr.msra.gmra.mrb[12].mxu0 %v1005_v18 }
 0xa56   :  { %v1128_v31 = vpop.f32.mrb[12].mxu0 }
 0xa57   :  { %v1129_v32 = vadd.f32 %v1128_v31, %v1009_v53  ;;  %v1130_v33 = vpop.f32.mrb[13].mxu0 }
 0xa58   :  { %v1131_v34 = vadd.f32 %v1130_v33, %v1013_v30  ;;  %v1132_v35 = vpop.f32.mrb[14].mxu0 }
 0xa59   :  { %v1137_v36 = vmul.f32 0.70710677, %v1129_v32  ;;  %v1133_v37 = vpop.f32.mrb[15].mxu0  ;;  %v1135_v40 = vmul.f32 0.5, %v1129_v32 }
 0xa5a   :  { %v1138_v38 = vmul.f32 0.70710677, %v1131_v34  ;;  %v1136_v42 = vmul.f32 0.5, %v1131_v34 }
 0xa5b   :  { %1728 = verf.f32 %v1137_v36 }
 0xa5c   :  { %1730 = verf.f32 %v1138_v38 }
 0xa65   :  { %v1729_v0 = vpop.eup %1728 }
 0xa66   :  { %v1731_v39 = vpop.eup %1730  ;;  %v1141_v41 = vadd.f32 1.0, %v1729_v0 }
 0xa67   :  { %v1142_v43 = vadd.f32 1.0, %v1731_v39 }
 0xa68   :  { %v1143_v45 = vmul.f32 %v1141_v41, %v1135_v40 }
 0xa69   :  { %v1144_v46 = vmul.f32 %v1142_v43, %v1136_v42 }
 0xa6a   :  { %v1145_v22 = vpack.c.bf16 %v1143_v45, %v1143_v45 }
 0xa6b   :  { %v1146_v47 = vpack.c.bf16 %v1144_v46, %v1144_v46 }
 0xa6d   :  { %1279 = vmatprep.mubr.bf16.mxu1 %v1146_v47 }
 0xa6e   :  { %1280 = vmatmul.mubr.bf16.vlgmr.msra.gmra.mrb[12].mxu1 %v1145_v22 }
 0xb41   :  { %v1499_v48 = vpop.f32.mrb[12].mxu1 }
 0xb42   :  { %v1500_v50 = vpop.f32.mrb[13].mxu1 }
 0xb43   :  { %v1501_v51 = vadd.f32 %v1500_v50, %v1499_v48  ;;  %v1502_v52 = vpop.f32.mrb[14].mxu1 }
 0xb44   :  { %v1503_v54 = vpop.f32.mrb[15].mxu1 }
 0xb45   :  { %v1282_v55 = vadd.f32 %v1501_v51, %v1150_v49 }
 0xb47   :  { %v1287_v56 = vadd.f32 %v1282_v55, %v1004_v17 }
 0xb49   :  { %1288 = vadd.xlane.f32.xlu0 %v1287_v56 }
 0xbd6   :  { %v1289_v57 = vpop.xlane.xlu0 %1288 }
 0xbd7   :  { %v1290_v58 = vmul.f32 0.0078125, %v1289_v57 }
 0xbd9   :  { %v1291_v59 = vsub.f32 %v1287_v56, %v1290_v58 }
 0xbdb   :  { %v1292_v60 = vmul.f32 %v1291_v59, %v1291_v59 }
 0xbdd   :  { %1293 = vadd.xlane.f32.xlu1 %v1292_v60 }
 0xc6a   :  { %v1294_v61 = vpop.xlane.xlu1 %1293 }
 0xc6b   :  { %v1295_v3 = vmul.f32 0.0078125, %v1294_v61 }
 0xc6d   :  { %v1296_v4 = vadd.f32 1e-05, %v1295_v3 }
 0xc6f   :  { %1732 = vrsqrt.f32 %v1296_v4 }
 0xc79   :  { %v1733_v5 = vpop.eup %1732 }
 0xc7a   :  { %v1298_v6 = vmul.f32 %v1733_v5, %v1291_v59 }
 0xc7c   :  { %v1303_v8 = vmul.f32 %v1302_v44, %v1298_v6 }
 0xc7e   :  { %v1308_v10 = vadd.f32 %v1307_v7, %v1303_v8 }
 0xc80   :  { %1309 = vst [vmem:[#allocation15] sm:$0xff] %v1308_v10 }
 0xc81   :  { %1887 = shalt.err (!%p1884_p13)
}
 0xc82   :  { %s1888_s18 = scalar_lea.hbm %s2190_s7, 128 }
 0xc83   :  { %p1889_p0 = scmp.ne.s32.totalorder %s2190_s7, %s1888_s18  ;;  %p1892_p1 = scmp.lt.u32.totalorder %s1888_s18, %s2190_s7 }
 0xc85   :  { %p1894_p2 = pnand %p1892_p1, %p1889_p0 }
 0xc87   :  { %1897 = shalt.err (!%p1894_p2)
}
 0xc88   :  { %1319 = dma.vmem_to_hbm [thread:$0]  %s1317_s14, 128, %s2190_s7, [#allocation6]  }
 0xc89   :  { %1908 = dma.done.wait [#allocation6], 128  }
 0xc8a   :  { %1909 = vsyncadd [#allocation6], 4294967168 }
 0xc8b   :  { %1323 = vsyncpa [#allocation5], 1 }
 0xc8c   :  { %1324 = vsyncpa [#allocation8], 1 }
 0xc8d   :  { %1325 = vsyncpa [#allocation11], 1 }
 0xc8e   :  { %1326 = vsyncpa [#allocation14], 1 }
 0xc8f   :  { %1327 = vsyncpa [#allocation6], 1 }

</bundles_post_ra>
